<compile_context>
chip_gen: v7x
topology: tpu7x:2x2x1
jax: 0.10.0
libtpu: 0.0.40
codegen_flags: <defaults>
</compile_context>

<pallas_src>
import functools

import jax
import jax.numpy as jnp
from jax.experimental import pallas as pl
from jax.experimental.pallas import tpu as pltpu


def _posenc_kernel(coefs_ref, o_ref, tab_ref, *, fold: int):
    """Emit one (tile_rows, k*D) slab of the PE table for one batch index.

    coefs_ref: (3, k*D) f32   row 0: tiled angles, row 1: fold offsets m,
                              row 2: parity (1.0 = sin column, 0.0 = cos column)
    o_ref:     (tile_rows, k*D)  output tile (batch dim squeezed out)
    tab_ref:   (tile_rows, k*D)  VMEM scratch caching the tile across batch
    """
    n = pl.program_id(0)   # N-tile index ("parallel")
    b = pl.program_id(1)   # batch index ("arbitrary", innermost)

    @pl.when(b == 0)
    def _compute_tile():
        tile_rows, _ = tab_ref.shape
        coefs = coefs_ref[...]
        ang = coefs[0:1, :]          # (1, k*D) angle per lane
        off = coefs[1:2, :]          # (1, k*D) fold offset m in [0, k)
        par = coefs[2:3, :]          # (1, k*D) 1.0 even col (sin), 0.0 odd (cos)

        row = (jax.lax.broadcasted_iota(jnp.int32, (tile_rows, 1), 0)
               + n * tile_rows)                       # folded row index R
        # position p = R*k + m, exact in f32 for p < 2^24
        pos = row.astype(jnp.float32) * jnp.float32(fold) + off
        arg = pos * ang                               # single product == torch
        vals = jnp.where(par > 0.5, jnp.sin(arg), jnp.cos(arg))
        tab_ref[...] = vals.astype(tab_ref.dtype)

    o_ref[...] = tab_ref[...]


def _choose_fold(n_ctx: int, d_model: int) -> int:
    """Fold factor k (k positions per output row) to make the last dim lane-dense."""
    if d_model >= 128:
        return 1
    k = max(1, 128 // d_model)
    while k > 1 and n_ctx % k != 0:
        k -= 1
    return k


def _choose_tile_rows(n_rows: int, row_bytes: int, budget_bytes: int) -> int:
    """Rows per tile from a VMEM byte budget; multiple of 8 or the full extent."""
    target = max(8, (budget_bytes // max(row_bytes, 1)) // 8 * 8)
    if n_rows <= target:
        if n_rows >= 16:
            # Split into >= 2 tiles so the "parallel" axis can span both v7x cores.
            return max(8, ((n_rows + 1) // 2 + 7) // 8 * 8)
        return n_rows          # full extent (legal even if not a multiple of 8)
    return target


def make_angles(d_model: int) -> jnp.ndarray:
    """Mirror PositionalEncoding.__encode_embedding (the frozen nn.Parameter)."""
    idx = jnp.arange(d_model)
    exponent = (2 * (idx // 2)).astype(jnp.float32)   # angles[1::2] = angles[0::2]
    angles = 1.0 / jnp.power(10000.0, exponent / d_model)
    return angles.reshape(1, d_model).astype(jnp.float32)


def positional_encoding(
    x: jnp.ndarray,
    angles: jnp.ndarray,
    *,
    out_dtype=jnp.float32,          # set jnp.bfloat16 if the consumer adds in bf16
    tile_budget_bytes: int = 4 << 20,
) -> jnp.ndarray:
    """Forward: x (B, N, D) -> (B, N, D) sinusoidal positional encodings."""
    B, N, D = x.shape
    angles = jnp.asarray(angles, jnp.float32).reshape(D)

    k = _choose_fold(N, D)          # positions folded per output row
    nf = N // k                     # folded rows
    kd = k * D                      # lane width of folded table

    itemsize = jnp.dtype(out_dtype).itemsize
    tile_rows = _choose_tile_rows(nf, kd * itemsize, tile_budget_bytes)
    n_tiles = pl.cdiv(nf, tile_rows)

    # Single packed invariant input: (3, k*D).
    col = jnp.arange(D)
    parity = (col % 2 == 0).astype(jnp.float32)
    ang_row = jnp.tile(angles, k)
    off_row = jnp.repeat(jnp.arange(k, dtype=jnp.float32), D)
    par_row = jnp.tile(parity, k)
    coefs = jnp.stack([ang_row, off_row, par_row], axis=0)

    tile_bytes = tile_rows * kd * itemsize
    vmem_limit = int(min(max(4 * tile_bytes + (1 << 20), 16 << 20), 48 << 20))

    folded = pl.pallas_call(
        functools.partial(_posenc_kernel, fold=k),
        out_shape=jax.ShapeDtypeStruct((B, nf, kd), out_dtype),
        grid_spec=pltpu.PrefetchScalarGridSpec(
            num_scalar_prefetch=0,
            grid=(n_tiles, B),
            in_specs=[pl.BlockSpec((3, kd), lambda n, b: (0, 0))],
            out_specs=pl.BlockSpec((None, tile_rows, kd), lambda n, b: (b, n, 0)),
            scratch_shapes=[pltpu.VMEM((tile_rows, kd), out_dtype)],
        ),
        compiler_params=pltpu.CompilerParams(
            dimension_semantics=("parallel", "arbitrary"),
            vmem_limit_bytes=vmem_limit,
        ),
    )(coefs)

    # Un-fold: (B, N/k, k*D) -> (B, N, D).  Row-major contiguous, so this is a
    # free (bitcast-style) reshape, not a data-moving pass.
    return folded.reshape(B, N, D)


def positional_encoding_ref(x: jnp.ndarray, angles: jnp.ndarray) -> jnp.ndarray:
    """Pure-JAX reference mirroring the torch forward exactly."""
    B, N, D = x.shape
    pos = jnp.arange(N, dtype=jnp.float32)[:, None]                 # (N, 1)
    pa = pos * jnp.asarray(angles, jnp.float32).reshape(1, D)       # outer product
    pa = pa.at[:, 0::2].set(jnp.sin(pa[:, 0::2]))
    pa = pa.at[:, 1::2].set(jnp.cos(pa[:, 1::2]))
    return jnp.broadcast_to(pa[None], (B, N, D)).astype(jnp.float32)


if __name__ == "__main__":
    key = jax.random.PRNGKey(0)
    B, N, D = 2, 8, 32                      # batch=2, seq=8, d_model=32
    x = jax.random.normal(key, (B, N, D), dtype=jnp.float32)

    angles = make_angles(D)                 # the frozen nn.Parameter

    out = positional_encoding(x, angles)
    out = jax.block_until_ready(out)

    ref = positional_encoding_ref(x, angles)
    assert out.shape == (B, N, D)
    assert out.dtype == jnp.float32
    assert jnp.allclose(out, ref, atol=1e-5, rtol=1e-5)
    print("KERNEL_OK")
</pallas_src>

<mosaic_0001>
module attributes {stable_mosaic.version = 11 : i64} {
  func.func @_posenc_kernel(%arg0: i32, %arg1: i32, %arg2: memref<3x128xf32, #tpu.memory_space<vmem>>, %arg3: memref<1x2x128xf32, #tpu.memory_space<vmem>>, %arg4: memref<2x128xf32, #tpu.memory_space<vmem>>) attributes {dimension_semantics = [#tpu.dimension_semantics<parallel>, #tpu.dimension_semantics<arbitrary>], iteration_bounds = array<i64: 1, 2>, scalar_prefetch = 0 : i64, scratch_operands = 1 : i64, tpu.core_type = #tpu.core_type<tc>, window_params = [{pipeline_mode = #tpu.pipeline_mode<synchronous>, transform_indices = @transform_0, window_bounds = array<i64: 3, 128>}, {transform_indices = @transform_1, window_bounds = array<i64: 1, 2, 128>}]} {
    %c0_i32 = arith.constant 0 : i32
    %0 = arith.cmpi eq, %arg1, %c0_i32 : i32
    %1 = arith.extui %0 : i1 to i32
    %c0_i32_0 = arith.constant 0 : i32
    %2 = arith.cmpi ne, %1, %c0_i32_0 : i32
    scf.if %2 {
      %c0_5 = arith.constant 0 : index
      %c0_6 = arith.constant 0 : index
      %7 = vector.load %arg2[%c0_5, %c0_6] : memref<3x128xf32, #tpu.memory_space<vmem>>, vector<3x128xf32>
      %8 = vector.extract_strided_slice %7 {offsets = [0, 0], sizes = [1, 128], strides = [1, 1]} : vector<3x128xf32> to vector<1x128xf32>
      %9 = vector.extract_strided_slice %7 {offsets = [1, 0], sizes = [1, 128], strides = [1, 1]} : vector<3x128xf32> to vector<1x128xf32>
      %10 = vector.extract_strided_slice %7 {offsets = [2, 0], sizes = [1, 128], strides = [1, 1]} : vector<3x128xf32> to vector<1x128xf32>
      %11 = tpu.iota {dimensions = array<i32: 0>} : vector<2x1xi32>
      %c2_i32 = arith.constant 2 : i32
      %12 = arith.muli %arg0, %c2_i32 : i32
      %13 = vector.broadcast %12 : i32 to vector<2x1xi32>
      %14 = arith.addi %11, %13 : vector<2x1xi32>
      %15 = arith.sitofp %14 : vector<2x1xi32> to vector<2x1xf32>
      %cst = arith.constant 4.000000e+00 : f32
      %16 = vector.broadcast %cst : f32 to vector<2x1xf32>
      %17 = arith.mulf %15, %16 : vector<2x1xf32>
      %18 = vector.broadcast %17 : vector<2x1xf32> to vector<2x128xf32>
      %19 = vector.broadcast %9 : vector<1x128xf32> to vector<2x128xf32>
      %20 = arith.addf %18, %19 : vector<2x128xf32>
      %21 = vector.broadcast %8 : vector<1x128xf32> to vector<2x128xf32>
      %22 = arith.mulf %20, %21 : vector<2x128xf32>
      %cst_7 = arith.constant 5.000000e-01 : f32
      %23 = vector.broadcast %cst_7 : f32 to vector<1x128xf32>
      %24 = arith.cmpf ogt, %10, %23 : vector<1x128xf32>
      %25 = math.sin %22 : vector<2x128xf32>
      %26 = math.cos %22 : vector<2x128xf32>
      %27 = vector.shape_cast %24 : vector<1x128xi1> to vector<1x128xi1>
      %28 = vector.broadcast %27 : vector<1x128xi1> to vector<2x128xi1>
      %29 = arith.select %28, %25, %26 : vector<2x128xi1>, vector<2x128xf32>
      %c0_8 = arith.constant 0 : index
      %c0_9 = arith.constant 0 : index
      %30 = vector.load %arg4[%c0_8, %c0_9] : memref<2x128xf32, #tpu.memory_space<vmem>>, vector<2x128xf32>
      tpu.vector_store %arg4[%c0_8, %c0_9], %29 {strides = array<i32>} : memref<2x128xf32, #tpu.memory_space<vmem>>, vector<2x128xf32>,
    } else {
    }
    %c0 = arith.constant 0 : index
    %c0_1 = arith.constant 0 : index
    %3 = vector.load %arg4[%c0, %c0_1] : memref<2x128xf32, #tpu.memory_space<vmem>>, vector<2x128xf32>
    %c0_2 = arith.constant 0 : index
    %c0_3 = arith.constant 0 : index
    %c0_4 = arith.constant 0 : index
    %4 = vector.load %arg3[%c0_2, %c0_3, %c0_4] : memref<1x2x128xf32, #tpu.memory_space<vmem>>, vector<1x2x128xf32>
    %5 = vector.shape_cast %4 : vector<1x2x128xf32> to vector<2x128xf32>
    %6 = vector.shape_cast %3 : vector<2x128xf32> to vector<1x2x128xf32>
    tpu.vector_store %arg3[%c0_2, %c0_3, %c0_4], %6 {strides = array<i32>} : memref<1x2x128xf32, #tpu.memory_space<vmem>>, vector<1x2x128xf32>,
    return
  }
  func.func @transform_0(%arg0: i32, %arg1: i32) -> (i32, i32) {
    %c0_i32 = arith.constant 0 : i32
    %c0_i32_0 = arith.constant 0 : i32
    %c0_i32_1 = arith.constant 0 : i32
    return %c0_i32, %c0_i32_0 : i32, i32
  }
  func.func @transform_1(%arg0: i32, %arg1: i32) -> (i32, i32, i32) {
    %c0_i32 = arith.constant 0 : i32
    %c0_i32_0 = arith.constant 0 : i32
    return %arg1, %arg0, %c0_i32 : i32, i32, i32
  }
}

</mosaic_0001>

<bundles_post_ra>
// kernel: tpu_custom_call.1
= control target key start
LH: loop header
LB: loop body
LE: loop exit
PB: predicated region body
PF: predicated region fallthrough
CT: control target
= control target key end

     0   :  { %6 = vsyncpa [#allocation4], 0  ;;  %s852_s0 = inlined_call_operand.hbm [shape: f32[3,128], index: 0, kind: input, shape index: {}]   ;;  %s853_s1 = inlined_call_operand.hbm [shape: f32[2,2,128], index: 1, kind: output, shape index: {}]  }
   0x1   :  { %7 = vsyncpa [#allocation5], 0 }
   0x2   :  { %9 = vsyncpa [#allocation5 + $0x1], 0  ;;  %s677_s6 = smov 0   ;;  %s679_s7 = smov 0  }
   0x3   :  { %s681_s8 = smov 0   ;;  %s683_s9 = smov 0  }
   0x4   :  { %s685_s10 = smov 0   ;;  %s687_s11 = smov 0  }
   0x5 LB: > { %s445_s12 = sadd.s32 4294967295, %s656_s11   ;;  %s446_s13 = sadd.s32 4294967294, %s656_s11   ;;  %s656_s11 = sphi %s687_s11, %s15_s11   ;;  %s652_s10 = sphi %s685_s10, %s871_s10   ;;  %s648_s9 = sphi %s683_s9, %s870_s9   ;;  %s644_s8 = sphi %s681_s8, %s869_s8   ;;  %s640_s7 = sphi %s679_s7, %s868_s7   ;;  %s636_s6 = sphi %s677_s6, %s867_s6  }
   0x6   : > { %s24_s14 = sadd.s32 1, %s652_s10  ;;  %s57_s15 = sadd.s32 1, %s644_s8 }
   0x7   : > { %p25_p0 = scmp.ge.s32.totalorder %s24_s14, 2  ;;  %p67_p1 = scmp.ne.s32.totalorder %s644_s8, %s640_s7 }
   0x8   : > { %p68_p2 = scmp.eq.s32.totalorder %s445_s12, 1  ;;  %p73_p3 = scmp.ne.s32.totalorder %s640_s7, %s636_s6 }
   0x9   : > { %s873_s14 = smov (%p25_p0, %s24_s14), 0  ;;  %p74_p5 = scmp.eq.s32.totalorder %s446_s13, 1 }
   0xa   : > { %p717_p4 = por %p68_p2, %p67_p1  ;;  %s52_s17 = ssub.s32 %s652_s10, %s873_s14 }
   0xb   : > { %p447_p6 = scmp.ge.s32.totalorder %s656_s11, 1  ;;  %p55_p7 = scmp.eq.s32.totalorder %s52_s17, 0 }
   0xc   : > { %s858_s16 = scalar_select %p717_p4, 1, 0 }
   0xd   : > { %p724_p8 = por %p74_p5, %p73_p3  ;;  %p81_p9 = scmp.lt.s32.totalorder %s656_s11, 3 }
   0xe   : > { %s730_s19 = scalar_select %p55_p7, %s644_s8, %s57_s15  }
   0xf   : > { %s859_s18 = scalar_select %p724_p8, 1, 0 }
  0x10   : > { %p732_p10 = pnand %p447_p6, %p81_p9  ;;  %p736_p11 = scmp.eq.s32.totalorder %s445_s12, 0 }
  0x11   : > { %s658_s22 = smov [#allocation3]   ;;  %s546_s27 = scalar_lea.hbm %s852_s0, 64 }
  0x12   : > { %s860_s20 = scalar_select %p732_p10, 1, 0 }
  0x13   : > { %s861_s21 = scalar_select %p736_p11, 1, 0 }
  0x14   : > { %p475_p12 = pneg %p732_p10  ;;  %s94_s23 = sshll.u32 %s658_s22, 4  ;;  %s95_s23 = int_to_ptr.vmem [resolvable:$true] %s94_s23 }
  0x15   : > { %p547_p0 = scmp.ne.s32.totalorder %s852_s0, %s546_s27  ;;  %p553_p5 = scmp.lt.u32.totalorder %s546_s27, %s852_s0 }
  0x16   : > { %p744_p13 = pnand %p736_p11, %p475_p12 }
  0x18   : > { %p548_p1 = pneg %p744_p13 }
  0x1a   : > { %p549_p2 = pnand %p548_p1, %p547_p0 }
  0x1c   : > { %p550_p3 = pneg %p549_p2 }
  0x1e   : > { %p555_p6 = pnand %p553_p5, %p550_p3 }
  0x20   : > { %558 = shalt.err (!%p555_p6)
}
  0x21   : > { %s559_s3 = scalar_lea.vmem %s95_s23, 64  ;;  %p567_p8 = scmp.lt.s32.totalorder %s95_s23, %s95_s23 }
  0x22   : > { %p560_p7 = scmp.ne.s32.totalorder %s95_s23, %s559_s3  ;;  %p568_p4 = scmp.lt.s32.totalorder %s559_s3, %s559_s3 }
  0x24   : > { %p562_p9 = pnand %p560_p7, %p548_p1  ;;  %p569_p11 = por %p568_p4, %p567_p8 }
  0x26   : > { %p563_p12 = pneg %p562_p9 }
  0x28   : > { %p570_p10 = pnand %p569_p11, %p563_p12 }
  0x2a   : > { %573 = shalt.err (!%p570_p10)
}
  0x2b   : > { %478 = dma.hbm_to_vmem [thread:$0]  (!%p744_p13), %s852_s0, 64, %s95_s23, [#allocation4]  }
  0x2c   : > { %p863_p0 = scmp.ne.s32.totalorder %s860_s20, 0 }
  0x2d   : > { %p864_p2 = scmp.ne.s32.totalorder (!%p863_p0), %s861_s21, 0 }
  0x2e   : > { %107 = sbr.rel (%p863_p0) target bundleno = 174 (0xae), region = 24 }
  0x35   : > { %627 = dma.done.wait (%p864_p2), [#allocation4], 64  }
  0x36   : > { %629 = vsyncadd (%p864_p2), [#allocation4], 4294967232  ;;  %s119_s12 = sand.u32 1, %s640_s7   ;;  %p452_p4 = scmp.ne.s32.totalorder %s648_s9, 0 }
  0x37   : > { %s773_s13 = sshll.u32 %s119_s12, 1  ;;  %v126_v0 = vld [vmem:[#allocation3] sm:$0x7] (!%p452_p4)  ;;  %v127_v1 = vlaneseq (!%p452_p4)  ;;  %v659_v3 = vmov (!%p452_p4), 0   ;;  %v660_v26 = vmov (!%p452_p4), 683565275  }
  0x38   : > { %s121_s15 = scalar_lea.vmem [#allocation6], %s773_s13  ;;  %125 = sbr.rel (%p452_p4) target bundleno = 149 (0x95), region = 32  ;;  %vm144_vm0 = vcmp.gt.f32.partialorder (!%p452_p4), %v126_v0, 0.5  ;;  %v661_v28 = vmov (!%p452_p4), 2475754826  }
  0x39   : > { %v128_v2 = vshrl.u32 (!%p452_p4), %v127_v1, 7  ;;  %v352_v4 = vsel (!%p452_p4), %vm144_vm0, 1, %v659_v3  ;;  %v662_v30 = vmov (!%p452_p4), 2131351028   ;;  %v663_v32 = vmov (!%p452_p4), 2102212464  }
  0x3a   : > { %v664_v34 = vmov (!%p452_p4), 920167782   ;;  %v665_v41 = vmov (!%p452_p4), 1326507024  }
  0x3b   : > { %v132_v5 = vcvt.s32.f32 (!%p452_p4), %v128_v2  ;;  %v136_v6 = vsub.s32 (!%p452_p4), 1, %v128_v2  ;;  %v141_v7 = vsub.s32 (!%p452_p4), 0, %v128_v2  ;;  %v355_v8 = vsub.s32 (!%p452_p4), 2, %v128_v2 }
  0x3d   : > { %v133_v9 = vmul.f32 (!%p452_p4), 4.0, %v132_v5  ;;  %v137_v10 = vrot.slane (!%p452_p4), %v126_v0, %v136_v6  ;;  %v142_v11 = vrot.slane (!%p452_p4), %v126_v0, %v141_v7  ;;  %v777_v12 = vrot.slane (!%p452_p4), %v352_v4, %v355_v8 }
  0x3f   : > { %v138_v13 = vadd.f32 %v137_v10, %v133_v9 }
  0x41   : > { %v779_v14 = vmul.f32 %v142_v11, %v138_v13 }
  0x43   : > { %v148_v15 = vand.u32 2139095040, %v779_v14  ;;  %v145_v17 = vand.u32 2147483647, %v779_v14  ;;  %vm147_vm8 = vcmp.lt.s32.totalorder %v779_v14, 0  ;;  %vm237_vm0 = vweird.f32 %v779_v14 }
  0x45   : > { %v149_v16 = vshrl.u32 %v148_v15, 23  ;;  %v152_v20 = vand.u32 8388607, %v145_v17  ;;  %vm146_vm9 = vcmp.le.f32.partialorder %v145_v17, 0.7853982 }
  0x47   : > { %v453_v18 = vadd.s32 4294967169, %v149_v16  ;;  %v153_v23 = vor.u32 8388608, %v152_v20 }
  0x49   : > { %v155_v19 = vadd.s32 1, %v453_v18  ;;  %v193_v43 = vshll.u32 %v153_v23, 8 }
  0x4b   : > { %vm156_vm1 = vcmp.gt.s32.totalorder %v155_v19, 0 }
  0x4c   : > { %v157_v21 = vsel %vm156_vm1, %v155_v19, 0  ;;  %vm357_vm1 = vcmp.eq.s32.totalorder %v777_v12, 1 }
  0x4d   : > { %v159_v22 = vand.u32 31, %v157_v21  ;;  %v158_v24 = vshrl.u32 %v157_v21, 5 }
  0x4f   : > { %v160_v25 = vsub.s32 32, %v159_v22  ;;  %v162_v27 = vshll.u32 %v660_v26, %v159_v22  ;;  %v165_v29 = vshll.u32 %v661_v28, %v159_v22  ;;  %v168_v31 = vshll.u32 %v662_v30, %v159_v22 }
  0x50   : > { %v171_v33 = vshll.u32 %v663_v32, %v159_v22  ;;  %v174_v35 = vshll.u32 %v664_v34, %v159_v22  ;;  %vm177_vm2 = vcmp.lt.s32.totalorder %v158_v24, 1  ;;  %vm180_vm3 = vcmp.lt.s32.totalorder %v158_v24, 4 }
  0x51   : > { %v161_v36 = vshrl.u32 %v660_v26, %v160_v25  ;;  %v163_v37 = vshrl.u32 %v661_v28, %v160_v25  ;;  %v166_v38 = vshrl.u32 %v662_v30, %v160_v25  ;;  %v169_v39 = vshrl.u32 %v663_v32, %v160_v25 }
  0x52   : > { %v172_v40 = vshrl.u32 %v664_v34, %v160_v25  ;;  %v175_v42 = vshrl.u32 %v665_v41, %v160_v25  ;;  %vm178_vm4 = vcmp.lt.s32.totalorder %v158_v24, 2  ;;  %vm179_vm5 = vcmp.lt.s32.totalorder %v158_v24, 3 }
  0x53   : > { %v164_v44 = vor.u32 %v163_v37, %v162_v27  ;;  %v167_v45 = vor.u32 %v166_v38, %v165_v29  ;;  %v170_v46 = vor.u32 %v169_v39, %v168_v31 }
  0x54   : > { %v173_v47 = vor.u32 %v172_v40, %v171_v33  ;;  %v176_v48 = vor.u32 %v175_v42, %v174_v35 }
  0x55   : > { %v181_v49 = vsel %vm177_vm2, %v161_v36, %v164_v44  ;;  %v182_v50 = vsel %vm180_vm3, %v170_v46, 2102212464  ;;  %v185_v51 = vsel %vm177_vm2, %v164_v44, %v167_v45  ;;  %v189_v52 = vsel %vm177_vm2, %v167_v45, %v170_v46 }
  0x56   : > { %v183_v53 = vsel %vm179_vm5, %v167_v45, %v182_v50  ;;  %v186_v54 = vsel %vm180_vm3, %v173_v47, 920167782  ;;  %v190_v55 = vsel %vm180_vm3, %v176_v48, 1326507024 }
  0x57   : > { %v187_v56 = vsel %vm179_vm5, %v170_v46, %v186_v54  ;;  %v191_v57 = vsel %vm179_vm5, %v173_v47, %v190_v55  ;;  %v184_v58 = vsel %vm178_vm4, %v181_v49, %v183_v53 }
  0x58   : > { %v188_v59 = vsel %vm178_vm4, %v185_v51, %v187_v56  ;;  %v192_v60 = vsel %vm178_vm4, %v189_v52, %v191_v57  ;;  %v200_v1 = vmul.u32 %v193_v43, %v184_v58 }
  0x59   : > { %v785_v61 = vmul.u32.u64.low %v193_v43, %v192_v60  ;;  %v786_v62 = vmul.u32.u64.high %v193_v43, %v192_v60, %v785_v61  ;;  %v788_v63 = vmul.u32.u64.low %v193_v43, %v188_v59  ;;  %v789_v0 = vmul.u32.u64.high %v193_v43, %v188_v59, %v788_v63 }
  0x5b   : > { %vm202_vm6 = vc.u32 %v786_v62, %v788_v63  ;;  %v203_v2 = vadd.s32 1, %v789_v0  ;;  %v201_v15 = vadd.s32 %v788_v63, %v786_v62 }
  0x5d   : > { %v204_v3 = vsel %vm202_vm6, %v203_v2, %v789_v0 }
  0x5e   : > { %v205_v4 = vadd.s32 %v204_v3, %v200_v1 }
  0x60   : > { %v206_v5 = vadd.s32 536870912, %v205_v4 }
  0x62   : > { %v207_v6 = vshrl.u32 %v206_v5, 30 }
  0x64   : > { %v208_v7 = vshll.u32 %v207_v6, 30  ;;  %v231_v28 = vsub.s32 4, %v207_v6 }
  0x66   : > { %v209_v8 = vsub.s32 %v205_v4, %v208_v7  ;;  %v232_v31 = vsel %vm147_vm8, %v231_v28, %v207_v6 }
  0x67   : > { %v234_v34 = vsel %vm146_vm9, 0, %v232_v31 }
  0x68   : > { %v211_v9 = vsub.s32 0, %v209_v8  ;;  %v238_v35 = vadd.s32 3, %v234_v34  ;;  %v342_v37 = vand.u32 3, %v234_v34 }
  0x6a   : > { %v454_v10 = vmin.u32 %v211_v9, %v209_v8  ;;  %v239_v36 = vand.u32 3, %v238_v35  ;;  %vm347_vm11 = vcmp.eq.s32.totalorder %v342_v37, 2  ;;  %vm344_vm13 = vcmp.eq.s32.totalorder %v342_v37, 0 }
  0x6b   : > { %vm343_vm15 = vcmp.lt.s32.totalorder %v342_v37, 2 }
  0x6c   : > { %v213_v11 = vclz %v454_v10  ;;  %vm244_vm10 = vcmp.eq.s32.totalorder %v239_v36, 2  ;;  %vm241_vm12 = vcmp.eq.s32.totalorder %v239_v36, 0  ;;  %vm240_vm14 = vcmp.lt.s32.totalorder %v239_v36, 2 }
  0x6e   : > { %v455_v13 = vadd.s32 4294967294, %v213_v11 }
  0x70   : > { %vm456_vm7 = vcmp.lt.s32.totalorder %v455_v13, 0 }
  0x71   : > { %v216_v16 = vsel %vm456_vm7, 0, %v455_v13 }
  0x72   : > { %v217_v18 = vsub.s32 32, %v216_v16  ;;  %v218_v19 = vshll.u32 %v209_v8, %v216_v16  ;;  %v221_v20 = vsub.s32 4294967266, %v216_v16 }
  0x74   : > { %v219_v21 = vshrl.u32 %v201_v15, %v217_v18  ;;  %v222_v22 = vadd.s32 127, %v221_v20 }
  0x76   : > { %v220_v23 = vor.u32 %v219_v21, %v218_v19  ;;  %v223_v24 = vshll.u32 %v222_v22, 23 }
  0x78   : > { %v224_v25 = vor.u32 4788187, %v223_v24  ;;  %v227_v26 = vcvt.s32.f32 %v220_v23 }
  0x7a   : > { %v225_v27 = vand.u32 2147483647, %v224_v25 }
  0x7c   : > { %v228_v29 = vmul.f32 %v227_v26, %v225_v27 }
  0x7e   : > { %v229_v30 = vxor.u32 2147483648, %v228_v29 }
  0x80   : > { %v230_v32 = vsel %vm147_vm8, %v229_v30, %v228_v29 }
  0x81   : > { %v233_v33 = vsel %vm146_vm9, %v779_v14, %v230_v32 }
  0x82   : > { %542 = vcosq.f32 %v233_v33 }
  0x83   : > { %544 = vsinq.f32 %v233_v33 }
  0x8c   : > { %v543_v38 = vpop.eup %542 }
  0x8d   : > { %v545_v39 = vpop.eup %544  ;;  %v245_v40 = vxor.u32 2147483648, %v543_v38 }
  0x8e   : > { %v242_v17 = vxor.u32 2147483648, %v545_v39 }
  0x8f   : > { %v246_v41 = vsel %vm244_vm10, %v245_v40, %v545_v39  ;;  %v349_v42 = vsel %vm347_vm11, %v245_v40, %v545_v39 }
  0x90   : > { %v243_v43 = vsel %vm241_vm12, %v543_v38, %v242_v17  ;;  %v346_v44 = vsel %vm344_vm13, %v543_v38, %v242_v17 }
  0x91   : > { %v247_v45 = vsel %vm240_vm14, %v243_v43, %v246_v41  ;;  %v350_v46 = vsel %vm343_vm15, %v346_v44, %v349_v42 }
  0x92   : > { %v248_v47 = vsel %vm237_vm0, nan, %v247_v45  ;;  %v351_v48 = vsel %vm237_vm0, nan, %v350_v46 }
  0x93   : > { %v358_v49 = vsel %vm357_vm1, %v248_v47, %v351_v48 }
  0x94   : > { %359 = vst [vmem:[#allocation2] sm:$0x3] %v358_v49 }
  0x95 PF: > { %s462_s17 = sshll.u32 %s648_s9, 5  ;;  %s377_s23 = sshll.u32 %s121_s15, 4  ;;  %s378_s23 = int_to_ptr.vmem [resolvable:$true] %s377_s23 }
  0x96   : > { %s807_s22 = scalar_lea.hbm %s853_s1, %s462_s17  ;;  %s363_s24 = scalar_lea.sflag [#allocation5], %s119_s12 }
  0x97   : > { %s574_s25 = scalar_lea.vmem %s378_s23, 32  ;;  %p865_p10 = scmp.ne.s32.totalorder %s858_s16, 0 }
  0x98   : > { %p575_p8 = scmp.ne.s32.totalorder %s378_s23, %s574_s25  ;;  %s666_s26 = smov [#allocation6]  }
  0x99   : > { %s578_s27 = sshll.u32 %s666_s26, 4  ;;  %s579_s27 = int_to_ptr.vmem [resolvable:$false] %s578_s27 }
  0x9a   : > { %p576_p11 = pnand %p575_p8, %p865_p10  ;;  %s580_s9 = scalar_lea.vmem %s579_s27, 64 }
  0x9b   : > { %v360_v50 = vld [vmem:[#allocation2] sm:$0x3]  ;;  %p581_p1 = scmp.lt.s32.totalorder %s378_s23, %s579_s27  ;;  %p582_p3 = scmp.lt.s32.totalorder %s580_s9, %s574_s25 }
  0x9c   : > { %361 = vst [vmem:[%s121_s15] sm:$0x3] %v360_v50  ;;  %p577_p13 = pneg %p576_p11 }
  0x9d   : > { %p583_p5 = por %p582_p3, %p581_p1 }
  0x9f   : > { %p584_p6 = pnand %p583_p5, %p577_p13 }
  0xa1   : > { %587 = shalt.err (!%p584_p6)
}
  0xa2   : > { %s588_s28 = scalar_lea.hbm %s807_s22, 32  ;;  %s592_s2 = scalar_lea.hbm %s853_s1, 64 }
  0xa3   : > { %p589_p7 = scmp.ne.s32.totalorder %s807_s22, %s588_s28  ;;  %p593_p0 = scmp.lt.u32.totalorder %s807_s22, %s853_s1 }
  0xa4   : > { %p594_p2 = scmp.lt.u32.totalorder %s592_s2, %s588_s28  ;;  %p596_p8 = scmp.lt.u32.totalorder %s588_s28, %s807_s22 }
  0xa5   : > { %p590_p9 = pnand %p589_p7, %p865_p10 }
  0xa6   : > { %p595_p4 = por %p594_p2, %p593_p0 }
  0xa7   : > { %p591_p12 = pneg %p590_p9 }
  0xa8   : > { %p597_p11 = por %p596_p8, %p595_p4 }
  0xaa   : > { %p598_p13 = pnand %p597_p11, %p591_p12 }
  0xac   : > { %601 = shalt.err (!%p598_p13)
}
  0xad   : > { %473 = dma.vmem_to_hbm [thread:$0]  (%p865_p10), %s378_s23, 32, %s807_s22, %s363_s24  }
  0xae PF: > { %p485_p1 = scmp.ge.s32.totalorder %s656_s11, 2  ;;  %s389_s5 = sand.u32 1, %s636_s6  }
  0xaf   : > { %p866_p3 = scmp.ne.s32.totalorder %s859_s18, 0  ;;  %s390_s12 = scalar_lea.sflag [#allocation5], %s389_s5 }
  0xb1   : > { %p480_p5 = pnand %p485_p1, %p866_p3 }
  0xb3   : > { %631 = dma.done.wait (!%p480_p5), %s390_s12, 32  }
  0xb4   : > { %633 = vsyncadd (!%p480_p5), %s390_s12, 4294967264  ;;  %s15_s11 = sadd.s32 1, %s656_s11   ;;  %s867_s6 = smov %s640_s7 }
  0xb5   : > { %p12_p6 = scmp.ge.s32.totalorder %s15_s11, 4   ;;  %s868_s7 = smov %s644_s8 }
  0xb6   : > { %s869_s8 = smov %s730_s19  ;;  %s870_s9 = smov %s652_s10 }
  0xb7   : > { %s871_s10 = smov %s873_s14  ;;  %14 = sbr.rel (!%p12_p6) target bundleno = 5 (0x5), region = 65 }
  0xbe   :  { %395 = vsyncpa [#allocation4], 1 }
  0xbf   :  { %397 = vsyncpa [#allocation4 + $0x1], 1 }
  0xc0   :  { %398 = vsyncpa [#allocation5], 1 }
  0xc1   :  { %400 = vsyncpa [#allocation5 + $0x1], 1 }

</bundles_post_ra>
